<compile_context>
chip_gen: v5e
topology: v5e:2x2
jax: 0.10.0
libtpu: 0.0.40
codegen_flags: <defaults>
</compile_context>

<pallas_src>
import functools

import jax
import jax.numpy as jnp
from jax.experimental import pallas as pl
from jax.experimental.pallas import tpu as pltpu


HIDDEN = 80  # torch.nn.Linear(1, 80) ... Linear(80, 1)

# Column layout of the packed "small params" slab, shape (80, 8) f32:
#   col 0: w1 (80,1)  col 1: b1  col 2: b2  col 3: b3  col 4: b4
#   col 5: w5^T (80,1)  col 6: b5 (scalar, stored at row 0)  col 7: pad
_W1, _B1, _B2, _B3, _B4, _W5, _B5 = 0, 1, 2, 3, 4, 5, 6


def mlp_kernel(x_ref, wh_ref, small_ref, o_ref, *, act_dtype):
    """Fused 5-layer MLP over one batch tile.

    x_ref     : (1, TB)     f32   input, batch on lanes
    wh_ref    : (3, 80, 80) bf16  hidden weights for layers 2..4 (out, in)
    small_ref : (80, 8)     f32   packed w1/b1..b4/w5/b5 columns (see above)
    o_ref     : (1, TB)     f32   output
    """
    x = x_ref[...]                          # (1, TB) f32
    small = small_ref[...]                  # (80, 8) f32
    w1 = small[:, _W1:_W1 + 1]              # (80, 1)
    b1 = small[:, _B1:_B1 + 1]
    b2 = small[:, _B2:_B2 + 1]
    b3 = small[:, _B3:_B3 + 1]
    b4 = small[:, _B4:_B4 + 1]
    w5 = small[:, _W5:_W5 + 1]              # (80, 1)  == w5.T
    b5 = small[0:1, _B5:_B5 + 1]            # (1, 1)

    # Layer 1: in_features == 1 -> pure VPU broadcast multiply (no MXU).
    h = jnp.tanh((w1 * x + b1).astype(act_dtype))            # (80, TB)

    # Layers 2..4: bf16 MXU operands, f32 accumulation, tanh on the EUP.
    for l, b in ((0, b2), (1, b3), (2, b4)):
        pre = jnp.dot(wh_ref[l], h.astype(jnp.bfloat16),
                      preferred_element_type=jnp.float32) + b
        h = jnp.tanh(pre.astype(act_dtype))

    # Layer 5: (1,80)@(80,TB) matvec done as VPU broadcast-mult + sublane
    # reduce (XLU), avoiding an MXU pass that would use <2% of the array plus
    # a result drain per grid step.  Output stays lane-dense (1, TB) f32.
    o_ref[...] = jnp.sum(w5 * h.astype(jnp.float32), axis=0,
                         keepdims=True) + b5
    # TODO(synk): on v5e with very large tiles, sub-chunk the layer chain with
    # an unrolled lax.fori_loop over 256-512-lane blocks if vst becomes binding.


def init_params(key):
    """Deterministic init mimicking PyTorch Linear default U(-1/sqrt(fan_in), +).

    Weights in PyTorch convention (out_features, in_features); biases as
    (out_features, 1) columns.
    """
    dims = [(1, HIDDEN), (HIDDEN, HIDDEN), (HIDDEN, HIDDEN),
            (HIDDEN, HIDDEN), (HIDDEN, 1)]
    params = []
    for (fan_in, fan_out) in dims:
        key, kw, kb = jax.random.split(key, 3)
        bound = 1.0 / (fan_in ** 0.5)
        w = jax.random.uniform(kw, (fan_out, fan_in), jnp.float32, -bound, bound)
        b = jax.random.uniform(kb, (fan_out, 1), jnp.float32, -bound, bound)
        params.append((w, b))
    return params


def pack_params(params):
    """Pack the 10 parameter arrays into 2 kernel inputs."""
    (w1, b1), (w2, b2), (w3, b3), (w4, b4), (w5, b5) = params
    wh = jnp.stack([w2, w3, w4], axis=0).astype(jnp.bfloat16)   # (3, 80, 80)
    small = jnp.zeros((HIDDEN, 8), jnp.float32)
    small = small.at[:, _W1].set(w1[:, 0])
    small = small.at[:, _B1].set(b1[:, 0])
    small = small.at[:, _B2].set(b2[:, 0])
    small = small.at[:, _B3].set(b3[:, 0])
    small = small.at[:, _B4].set(b4[:, 0])
    small = small.at[:, _W5].set(w5[0, :])
    small = small.at[0, _B5].set(b5[0, 0])
    return wh, small


def _act_dtype():
    """bf16 tanh/elementwise on v6e/v7x (bf16 EUP/VPU); f32 elsewhere (v5e...)."""
    try:
        kind = jax.devices()[0].device_kind.lower()
    except Exception:  # pragma: no cover - be safe on odd backends
        kind = ""
    if "v6" in kind or "v7" in kind:
        return jnp.bfloat16
    return jnp.float32


def _choose_tile_b(n, max_tile_b=4096):
    """Lane-tile: multiple of 128, as large as possible up to max_tile_b,
    but keeping >= 2 grid steps (v7x megacore) whenever the batch allows."""
    n128 = max(128, ((n + 127) // 128) * 128)
    tile = min(max_tile_b, n128)
    if n128 > 128:
        tile = min(tile, max(128, (n128 // 2) // 128 * 128))
    return tile


def simple_model_forward(x, params, *, max_tile_b=4096):
    """x: (N, 1) float32 -> (N, 1) float32.  Batch on lanes inside the kernel."""
    n = x.shape[0]
    tile_b = _choose_tile_b(n, max_tile_b)
    n_pad = ((n + tile_b - 1) // tile_b) * tile_b

    wh, small = pack_params(params)
    xt = jnp.zeros((1, n_pad), jnp.float32).at[0, :n].set(x[:, 0])

    grid = (n_pad // tile_b,)
    n_param_bytes = int(wh.size) * 2 + int(small.size) * 4
    cost = pl.CostEstimate(
        flops=2 * n_pad * (HIDDEN + 3 * HIDDEN * HIDDEN + HIDDEN),
        transcendentals=4 * HIDDEN * n_pad,
        bytes_accessed=4 * 2 * n_pad + n_param_bytes,
    )

    kernel = functools.partial(mlp_kernel, act_dtype=_act_dtype())

    out_t = pl.pallas_call(
        kernel,
        out_shape=jax.ShapeDtypeStruct((1, n_pad), jnp.float32),
        grid_spec=pltpu.PrefetchScalarGridSpec(
            num_scalar_prefetch=0,
            grid=grid,
            in_specs=[
                pl.BlockSpec((1, tile_b), lambda i: (0, i)),
                # Full-array constant-index blocks (block == full dims, so the
                # (8,128) divisibility constraint does not apply).
                pl.BlockSpec(wh.shape, lambda i: (0, 0, 0)),
                pl.BlockSpec(small.shape, lambda i: (0, 0)),
            ],
            out_specs=pl.BlockSpec((1, tile_b), lambda i: (0, i)),
        ),
        compiler_params=pltpu.CompilerParams(
            dimension_semantics=("parallel",)),
        cost_estimate=cost,
    )(xt, wh, small)

    # Back to PyTorch's (N, 1) convention; drop padding.
    return out_t[0, :n][:, None]


def reference_forward(x, params):
    """Pure-JAX f32 reference in the (N, in) convention, high-precision dots."""
    h = x
    for idx, (w, b) in enumerate(params):
        h = jnp.dot(h, w.T, precision=jax.lax.Precision.HIGHEST) + b.T
        if idx < len(params) - 1:
            h = jnp.tanh(h)
    return h


if __name__ == "__main__":
    key = jax.random.PRNGKey(0)
    kp, kx = jax.random.split(key)
    params = init_params(kp)

    N = 256  # small demo batch; tile picker yields tile_b=128 -> grid=(2,)
    x = jax.random.normal(kx, (N, 1), jnp.float32)

    y = simple_model_forward(x, params)
    y = jax.block_until_ready(y)

    y_ref = reference_forward(x, params)
    assert y.shape == (N, 1)
    # bf16 MXU operands (and bf16 tanh on v6e/v7x) vs. an f32 HIGHEST-precision
    # reference -> use a bf16-appropriate tolerance.
    assert jnp.allclose(y, y_ref, atol=2e-2, rtol=2e-2), "mismatch vs reference"

    print("KERNEL_OK")
</pallas_src>

<mosaic_0001>
module attributes {stable_mosaic.version = 11 : i64} {
  func.func @mlp_kernel(%arg0: i32, %arg1: memref<1x128xf32, #tpu.memory_space<vmem>>, %arg2: memref<3x80x80xbf16, #tpu.memory_space<vmem>>, %arg3: memref<80x8xf32, #tpu.memory_space<vmem>>, %arg4: memref<1x128xf32, #tpu.memory_space<vmem>>) attributes {dimension_semantics = [#tpu.dimension_semantics<parallel>], iteration_bounds = array<i64: 2>, scalar_prefetch = 0 : i64, scratch_operands = 0 : i64, tpu.core_type = #tpu.core_type<tc>, window_params = [{transform_indices = @transform_0, window_bounds = array<i64: 1, 128>}, {pipeline_mode = #tpu.pipeline_mode<synchronous>, transform_indices = @transform_1, window_bounds = array<i64: 3, 80, 80>}, {pipeline_mode = #tpu.pipeline_mode<synchronous>, transform_indices = @transform_2, window_bounds = array<i64: 80, 8>}, {transform_indices = @transform_3, window_bounds = array<i64: 1, 128>}]} {
    %c0 = arith.constant 0 : index
    %c0_0 = arith.constant 0 : index
    %0 = vector.load %arg1[%c0, %c0_0] : memref<1x128xf32, #tpu.memory_space<vmem>>, vector<1x128xf32>
    %c0_1 = arith.constant 0 : index
    %c0_2 = arith.constant 0 : index
    %1 = vector.load %arg3[%c0_1, %c0_2] : memref<80x8xf32, #tpu.memory_space<vmem>>, vector<80x8xf32>
    %2 = vector.extract_strided_slice %1 {offsets = [0, 0], sizes = [80, 1], strides = [1, 1]} : vector<80x8xf32> to vector<80x1xf32>
    %3 = vector.extract_strided_slice %1 {offsets = [0, 1], sizes = [80, 1], strides = [1, 1]} : vector<80x8xf32> to vector<80x1xf32>
    %4 = vector.extract_strided_slice %1 {offsets = [0, 2], sizes = [80, 1], strides = [1, 1]} : vector<80x8xf32> to vector<80x1xf32>
    %5 = vector.extract_strided_slice %1 {offsets = [0, 3], sizes = [80, 1], strides = [1, 1]} : vector<80x8xf32> to vector<80x1xf32>
    %6 = vector.extract_strided_slice %1 {offsets = [0, 4], sizes = [80, 1], strides = [1, 1]} : vector<80x8xf32> to vector<80x1xf32>
    %7 = vector.extract_strided_slice %1 {offsets = [0, 5], sizes = [80, 1], strides = [1, 1]} : vector<80x8xf32> to vector<80x1xf32>
    %8 = vector.extract_strided_slice %1 {offsets = [0, 6], sizes = [1, 1], strides = [1, 1]} : vector<80x8xf32> to vector<1x1xf32>
    %9 = vector.broadcast %2 : vector<80x1xf32> to vector<80x128xf32>
    %10 = vector.broadcast %0 : vector<1x128xf32> to vector<80x128xf32>
    %11 = arith.mulf %9, %10 : vector<80x128xf32>
    %12 = vector.broadcast %3 : vector<80x1xf32> to vector<80x128xf32>
    %13 = arith.addf %11, %12 : vector<80x128xf32>
    %14 = math.tanh %13 : vector<80x128xf32>
    %c0_3 = arith.constant 0 : index
    %c0_4 = arith.constant 0 : index
    %c0_5 = arith.constant 0 : index
    %15 = vector.load %arg2[%c0_3, %c0_4, %c0_5] : memref<3x80x80xbf16, #tpu.memory_space<vmem>>, vector<1x80x80xbf16>
    %16 = vector.shape_cast %15 : vector<1x80x80xbf16> to vector<80x80xbf16>
    %17 = arith.truncf %14 : vector<80x128xf32> to vector<80x128xbf16>
    %cst = arith.constant dense<0.000000e+00> : vector<80x128xf32>
    %18 = tpu.matmul %16, %17, %cst {dimension_numbers = #tpu.dot_dimension_numbers<[1], [0], [0], [1], [0, 0, 1, 1], [], []>} : vector<80x80xbf16>, vector<80x128xbf16>, vector<80x128xf32> -> vector<80x128xf32>
    %19 = vector.broadcast %4 : vector<80x1xf32> to vector<80x128xf32>
    %20 = arith.addf %18, %19 : vector<80x128xf32>
    %21 = math.tanh %20 : vector<80x128xf32>
    %c1 = arith.constant 1 : index
    %c0_6 = arith.constant 0 : index
    %c0_7 = arith.constant 0 : index
    %22 = vector.load %arg2[%c1, %c0_6, %c0_7] : memref<3x80x80xbf16, #tpu.memory_space<vmem>>, vector<1x80x80xbf16>
    %23 = vector.shape_cast %22 : vector<1x80x80xbf16> to vector<80x80xbf16>
    %24 = arith.truncf %21 : vector<80x128xf32> to vector<80x128xbf16>
    %cst_8 = arith.constant dense<0.000000e+00> : vector<80x128xf32>
    %25 = tpu.matmul %23, %24, %cst_8 {dimension_numbers = #tpu.dot_dimension_numbers<[1], [0], [0], [1], [0, 0, 1, 1], [], []>} : vector<80x80xbf16>, vector<80x128xbf16>, vector<80x128xf32> -> vector<80x128xf32>
    %26 = vector.broadcast %5 : vector<80x1xf32> to vector<80x128xf32>
    %27 = arith.addf %25, %26 : vector<80x128xf32>
    %28 = math.tanh %27 : vector<80x128xf32>
    %c2 = arith.constant 2 : index
    %c0_9 = arith.constant 0 : index
    %c0_10 = arith.constant 0 : index
    %29 = vector.load %arg2[%c2, %c0_9, %c0_10] : memref<3x80x80xbf16, #tpu.memory_space<vmem>>, vector<1x80x80xbf16>
    %30 = vector.shape_cast %29 : vector<1x80x80xbf16> to vector<80x80xbf16>
    %31 = arith.truncf %28 : vector<80x128xf32> to vector<80x128xbf16>
    %cst_11 = arith.constant dense<0.000000e+00> : vector<80x128xf32>
    %32 = tpu.matmul %30, %31, %cst_11 {dimension_numbers = #tpu.dot_dimension_numbers<[1], [0], [0], [1], [0, 0, 1, 1], [], []>} : vector<80x80xbf16>, vector<80x128xbf16>, vector<80x128xf32> -> vector<80x128xf32>
    %33 = vector.broadcast %6 : vector<80x1xf32> to vector<80x128xf32>
    %34 = arith.addf %32, %33 : vector<80x128xf32>
    %35 = math.tanh %34 : vector<80x128xf32>
    %36 = vector.broadcast %7 : vector<80x1xf32> to vector<80x128xf32>
    %37 = arith.mulf %36, %35 : vector<80x128xf32>
    %cst_12 = arith.constant dense<0.000000e+00> : vector<128xf32>
    %38 = vector.multi_reduction <add>, %37, %cst_12 [0] : vector<80x128xf32> to vector<128xf32>
    %39 = vector.shape_cast %38 : vector<128xf32> to vector<1x128xf32>
    %40 = vector.broadcast %8 : vector<1x1xf32> to vector<1x128xf32>
    %41 = arith.addf %39, %40 : vector<1x128xf32>
    %c0_13 = arith.constant 0 : index
    %c0_14 = arith.constant 0 : index
    %42 = vector.load %arg4[%c0_13, %c0_14] : memref<1x128xf32, #tpu.memory_space<vmem>>, vector<1x128xf32>
    tpu.vector_store %arg4[%c0_13, %c0_14], %41 {strides = array<i32>} : memref<1x128xf32, #tpu.memory_space<vmem>>, vector<1x128xf32>,
    return
  }
  func.func @transform_0(%arg0: i32) -> (i32, i32) {
    %c0_i32 = arith.constant 0 : i32
    %c0_i32_0 = arith.constant 0 : i32
    return %c0_i32, %arg0 : i32, i32
  }
  func.func @transform_1(%arg0: i32) -> (i32, i32, i32) {
    %c0_i32 = arith.constant 0 : i32
    %c0_i32_0 = arith.constant 0 : i32
    %c0_i32_1 = arith.constant 0 : i32
    %c0_i32_2 = arith.constant 0 : i32
    return %c0_i32, %c0_i32_0, %c0_i32_1 : i32, i32, i32
  }
  func.func @transform_2(%arg0: i32) -> (i32, i32) {
    %c0_i32 = arith.constant 0 : i32
    %c0_i32_0 = arith.constant 0 : i32
    %c0_i32_1 = arith.constant 0 : i32
    return %c0_i32, %c0_i32_0 : i32, i32
  }
  func.func @transform_3(%arg0: i32) -> (i32, i32) {
    %c0_i32 = arith.constant 0 : i32
    %c0_i32_0 = arith.constant 0 : i32
    return %c0_i32, %arg0 : i32, i32
  }
}

</mosaic_0001>

<bundles_post_ra>
// kernel: tpu_custom_call.1
= control target key start
LH: loop header
LB: loop body
LE: loop exit
PB: predicated region body
PF: predicated region fallthrough
CT: control target
= control target key end

     0   :  { %8 = vsyncpa [#allocation3], 0  ;;  %s1533_s0 = inlined_call_operand.vmem [shape: f32[1,256], index: 0, kind: input, shape index: {}]   ;;  %s1534_s1 = inlined_call_operand.hbm [shape: bf16[3,80,80], index: 1, kind: input, shape index: {}]   ;;  %s1535_s2 = inlined_call_operand.vmem [shape: f32[80,8], index: 2, kind: input, shape index: {}]   ;;  %s1536_s3 = inlined_call_operand.hbm [shape: f32[1,256], index: 3, kind: output, shape index: {}]  }
   0x1   :  { %9 = vsyncpa [#allocation4], 0 }
   0x2   :  { %11 = vsyncpa [#allocation4 + $0x1], 0  ;;  %s1288_s12 = smov 0   ;;  %s1290_s13 = smov 0  }
   0x3   :  { %s1292_s14 = smov 0   ;;  %s1294_s15 = smov 0  }
   0x4 LB: > { %s1309_s16 = sadd.s32 4294967295, %s1256_s15   ;;  %s882_s17 = sadd.s32 4294967294, %s1256_s15   ;;  %s1256_s15 = sphi %s1294_s15, %s1542_s15   ;;  %s1252_s14 = sphi %s1292_s14, %s1541_s14   ;;  %s1248_s13 = sphi %s1290_s13, %s1540_s13   ;;  %s1244_s12 = sphi %s1288_s12, %s1539_s12  }
   0x5   : > { %s1313_s18 = sadd.s32 1, %s1256_s15   ;;  %s92_s19 = sadd.s32 1, %s1252_s14 }
   0x6   : > { %s89_s20 = ssub.s32 %s1256_s15, %s1313_s18  ;;  %p102_p0 = scmp.ne.s32.totalorder %s1252_s14, %s1248_s13 }
   0x7   : > { %p90_p1 = scmp.eq.s32.totalorder %s89_s20, 0  ;;  %p103_p2 = scmp.eq.s32.totalorder %s1309_s16, 1 }
   0x8   : > { %p108_p3 = scmp.ne.s32.totalorder %s1248_s13, %s1244_s12  ;;  %p109_p4 = scmp.eq.s32.totalorder %s882_s17, 1 }
   0x9   : > { %s1324_s21 = scalar_select %p90_p1, %s1252_s14, %s92_s19  }
   0xa   : > { %p1326_p5 = por %p103_p2, %p102_p0  ;;  %p1330_p6 = por %p109_p4, %p108_p3 }
   0xb   : > { %p883_p7 = scmp.ge.s32.totalorder %s1256_s15, 1  ;;  %p116_p8 = scmp.lt.s32.totalorder %s1256_s15, 3 }
   0xc   : > { %p1009_p9 = scmp.eq.s32.totalorder %s1309_s16, 0  ;;  %s127_s26 = sshll.u32 %s1534_s1, 4  ;;  %s128_s26 = int_to_ptr.hbm [resolvable:$true] %s127_s26 }
   0xd   : > { %p117_p10 = pnand %p883_p7, %p116_p8  ;;  %s1258_s27 = smov [#allocation2]  }
   0xe   : > { %s129_s28 = sshll.u32 %s1258_s27, 4  ;;  %s1259_s29 = smov 64   ;;  %s130_s28 = int_to_ptr.vmem [resolvable:$true] %s129_s28 }
   0xf   : > { %p1001_p11 = pneg %p117_p10  ;;  %s1260_s30 = smov 4  }
  0x10   : > { %154 = sbr.rel (%p117_p10) target bundleno = 851 (0x353), region = 32 }
  0x11   : > { %p1002_p12 = pnand %p1009_p9, %p1001_p11 }
  0x13   : > { %1004 = dma.hbm_to_vmem [thread:$0]  (!%p1002_p12), %s128_s26, 1920, %s130_s28, [#allocation3], %s1259_s29, %s1259_s29, %s1260_s30  }
  0x15   : > { %1235 = dma.done.wait (%p1009_p9), [#allocation3], 1920  }
  0x16   : > { %1237 = vsyncadd (%p1009_p9), [#allocation3], 4294965376  ;;  %p176_p13 = scmp.lt.s32.totalorder %s1309_s16, 1  ;;  %v1261_v0 = vmov 1   ;;  %v1262_v1 = vmov 0   ;;  %v1353_v2 = vld [vmem:[%s1535_s2 + $0x40] sm:$0xff]  ;;  %s814_s24 = scalar_lea.hbm %s1536_s3, %s1309_s16 }
  0x17   : > { %1055 = vset.pattern.permute.xlu1 %v1261_v0  ;;  %1056 = vset.pattern.permute.xlu2 %v1262_v1  ;;  %v1358_v3 = vld [vmem:[%s1535_s2 + $0x30] sm:$0xff]  ;;  %v1370_v4 = vld [vmem:[%s1535_s2 + $0x48] sm:$0xff]  ;;  %v1375_v5 = vld [vmem:[%s1535_s2 + $0x38] sm:$0xff]  ;;  %v1263_v46 = vmov 2   ;;  %vm394_vm0 = vcmask 654336   ;;  %s818_s27 = sshll.u32 %s814_s24, 4  ;;  %s819_s27 = int_to_ptr.hbm [resolvable:$true] %s818_s27 }
  0x18   : > { %1054 = vset.pattern.permute.xlu0 %v1262_v1  ;;  %s1348_s4 = scalar_select %p176_p13, %s1309_s16, 1  ;;  %287 = vperm.xlu1 %1055, %v1353_v2   ;;  %v1383_v6 = vld [vmem:[%s1535_s2 + $0x20] sm:$0xff]  ;;  %v1391_v7 = vld [vmem:[%s1535_s2 + $0x28] sm:$0xff]  ;;  %v1399_v8 = vld [vmem:[%s1535_s2 + $0x10] sm:$0xff] }
  0x19   : > { %233 = vperm.xlu0 %1054, %v1353_v2   ;;  %223 = vperm.xlu2 %1056, %v1358_v3   ;;  %v1406_v9 = vld [vmem:[%s1535_s2 + $0x18] sm:$0xff]  ;;  %v1412_v10 = vld [vmem:[%s1535_s2 + $0x8] sm:$0xff]  ;;  %v1418_v11 = vld [vmem:[%s1535_s2] sm:$0xff]  ;;  %s1204_s29 = sshra.s32 %s819_s27, 4  ;;  %s1210_s6 = scalar_lea.hbm %s1536_s3, 2  ;;  %s1205_s29 = int_to_ptr.hbm [resolvable:$true] %s1204_s29 }
  0x1a   : > { %s178_s11 = scalar_lea.vmem %s1533_s0, %s1348_s4  ;;  %s174_s4 = sand.u32 1, %s1248_s13  }
  0x1b   : > { %v1429_v14 = vld [vmem:[%s178_s11] ss:$0 sm:$0xff]  ;;  %s175_s25 = scalar_lea.vmem [#allocation5], %s174_s4  ;;  %s806_s28 = scalar_lea.sflag [#allocation4], %s174_s4 }
  0x1c   : > { %s816_s26 = sshll.u32 %s175_s25, 4  ;;  %s1206_s30 = scalar_lea.hbm %s1205_s29, 1  ;;  %s817_s26 = int_to_ptr.vmem [resolvable:$true] %s816_s26 }
  0x1d   : > { %p1207_p0 = scmp.ne.s32.totalorder %s1205_s29, %s1206_s30  ;;  %p1211_p3 = scmp.lt.s32.totalorder %s1205_s29, %s1536_s3 }
  0x1e   : > { %p1212_p4 = scmp.lt.s32.totalorder %s1210_s6, %s1206_s30 }
  0x1f   : > { %p1208_p1 = pnand %p1207_p0, %p1326_p5 }
  0x20   : > { %291 = vperm.xlu1 %1055, %v1370_v4   ;;  %p1213_p7 = por %p1212_p4, %p1211_p3 }
  0x21   : > { %238 = vperm.xlu0 %1054, %v1370_v4   ;;  %228 = vperm.xlu2 %1056, %v1375_v5   ;;  %p1209_p2 = pneg %p1208_p1 }
  0x23   : > { %p1214_p8 = pnand %p1213_p7, %p1209_p2 }
  0x28   : > { %283 = vperm.xlu1 %1055, %v1375_v5  }
  0x29   : > { %1057 = vset.pattern.permute.xlu0 %v1261_v0  ;;  %213 = vperm.xlu2 %1056, %v1383_v6  }
  0x2a   : > { %279 = vperm.xlu0 %1057, %v1358_v3  }
  0x30   : > { %1058 = vset.pattern.permute.xlu1 %v1262_v1 }
  0x31   : > { %1059 = vset.pattern.permute.xlu2 %v1261_v0  ;;  %218 = vperm.xlu1 %1058, %v1391_v7  }
  0x32   : > { %275 = vperm.xlu0 %1057, %v1391_v7   ;;  %271 = vperm.xlu2 %1059, %v1383_v6  }
  0x39   : > { %203 = vperm.xlu1 %1058, %v1399_v8  }
  0x3a   : > { %263 = vperm.xlu0 %1057, %v1399_v8   ;;  %1060 = vset.pattern.permute.xlu2 %v1262_v1 }
  0x3b   : > { %208 = vperm.xlu2 %1060, %v1406_v9  }
  0x41   : > { %1061 = vset.pattern.permute.xlu1 %v1261_v0 }
  0x42   : > { %1062 = vset.pattern.permute.xlu0 %v1262_v1  ;;  %267 = vperm.xlu1 %1061, %v1406_v9  }
  0x43   : > { %198 = vperm.xlu0 %1062, %v1412_v10   ;;  %193 = vperm.xlu2 %1060, %v1418_v11  }
  0x4a   : > { %255 = vperm.xlu1 %1061, %v1418_v11  }
  0x4b   : > { %1063 = vset.pattern.permute.xlu2 %v1261_v0  ;;  %1066 = vset.pattern.permute.xlu0 %v1263_v46 }
  0x4c   : > { %259 = vperm.xlu2 %1063, %v1412_v10   ;;  %354 = vperm.xlu0 %1066, %v1358_v3  }
  0x52   : > { %1064 = vset.pattern.permute.xlu1 %v1263_v46 }
  0x53   : > { %362 = vperm.xlu1 %1064, %v1353_v2  }
  0x54   : > { %1065 = vset.pattern.permute.xlu2 %v1263_v46  ;;  %342 = vperm.xlu0 %1066, %v1406_v9  }
  0x55   : > { %366 = vperm.xlu2 %1065, %v1370_v4  }
  0x5b   : > { %358 = vperm.xlu1 %1064, %v1375_v5  }
  0x5d   : > { %346 = vperm.xlu2 %1065, %v1383_v6  }
  0x63   : > { %350 = vperm.xlu1 %1064, %v1391_v7  }
  0x65   : > { %338 = vperm.xlu2 %1065, %v1399_v8  }
  0x6b   : > { %330 = vperm.xlu1 %1064, %v1418_v11  }
  0x6d   : > { %334 = vperm.xlu2 %1065, %v1412_v10  }
  0x73   : > { %v224_v12 = vpop.permute.xlu2 %223 }
  0x74   : > { %v250_v25 = vmul.f32 %v1429_v14, %v224_v12 }
  0x7b   : > { %v229_v13 = vpop.permute.xlu2 %228 }
  0x7c   : > { %v251_v24 = vmul.f32 %v1429_v14, %v229_v13 }
  0x83   : > { %v214_v21 = vpop.permute.xlu2 %213 }
  0x84   : > { %v248_v34 = vmul.f32 %v1429_v14, %v214_v21 }
  0x8a   : > { %v288_v15 = vpop.permute.xlu1 %287 }
  0x8b   : > { %v234_v16 = vpop.permute.xlu0 %233 }
  0x8c   : > { %v252_v17 = vmul.f32 %v1429_v14, %v234_v16  ;;  %v272_v32 = vpop.permute.xlu2 %271  ;;  %v965_v16 = vld [vmem:[#allocation2] sm:$0xff] }
  0x8d   : > { %v298_v38 = vadd.f32 %v272_v32, %v248_v34 }
  0x8e   : > { %v302_v18 = vadd.f32 %v288_v15, %v252_v17  ;;  %v967_v17 = vld [vmem:[#allocation2 + $0x10] sm:$0xff] }
  0x90   : > { %1080 = vtanh.f32 %v302_v18  ;;  %v968_v18 = vld [vmem:[#allocation2 + $0x18] sm:$0xff] }
  0x92   : > { %v292_v19 = vpop.permute.xlu1 %291 }
  0x93   : > { %v239_v20 = vpop.permute.xlu0 %238 }
  0x94   : > { %v253_v22 = vmul.f32 %v1429_v14, %v239_v20 }
  0x95   : > { %v209_v41 = vpop.permute.xlu2 %208 }
  0x96   : > { %v303_v23 = vadd.f32 %v292_v19, %v253_v22  ;;  %v1081_v29 = vpop.eup %1080  ;;  %v247_v53 = vmul.f32 %v1429_v14, %v209_v41  ;;  %v969_v19 = vld [vmem:[#allocation2 + $0x20] sm:$0xff] }
  0x98   : > { %1082 = vtanh.f32 %v303_v23 }
  0x9a   : > { %v284_v26 = vpop.permute.xlu1 %283 }
  0x9b   : > { %v301_v27 = vadd.f32 %v284_v26, %v251_v24 }
  0x9c   : > { %v280_v28 = vpop.permute.xlu0 %279 }
  0x9d   : > { %v300_v30 = vadd.f32 %v280_v28, %v250_v25  ;;  %1084 = vtanh.f32 %v301_v27  ;;  %v194_v50 = vpop.permute.xlu2 %193 }
  0x9e   : > { %v1083_v31 = vpop.eup %1082  ;;  %v244_v60 = vmul.f32 %v1429_v14, %v194_v50 }
  0x9f   : > { %1086 = vtanh.f32 %v300_v30  ;;  %v328_v33 = vpack.c.bf16 %v1083_v31, %v1081_v29  ;;  %v1264_v31 = vmov 3  }
  0xa0   : > { %1088 = vtanh.f32 %v298_v38  ;;  %1068 = vset.pattern.permute.xlu1 %v1264_v31  ;;  %1067 = vset.pattern.permute.xlu0 %v1264_v31 }
  0xa1   : > { %413 = vmatpush.bf16.msra.mxu0 %v328_v33  ;;  %980 = vmatpush.bf16.msra.mxu3 %v328_v33 }
  0xa2   : > { %507 = vperm.xlu1 %1068, %v1370_v4   ;;  %1069 = vset.pattern.permute.xlu2 %v1264_v31 }
  0xa3   : > { %v1085_v35 = vpop.eup %1084  ;;  %v219_v39 = vpop.permute.xlu1 %218  ;;  %503 = vperm.xlu0 %1067, %v1353_v2   ;;  %495 = vperm.xlu2 %1069, %v1358_v3  }
  0xa4   : > { %v276_v36 = vpop.permute.xlu0 %275  ;;  %v249_v40 = vmul.f32 %v1429_v14, %v219_v39 }
  0xa5   : > { %v1087_v37 = vpop.eup %1086 }
  0xa6   : > { %v327_v42 = vpack.c.bf16 %v1085_v35, %v1087_v37  ;;  %v299_v43 = vadd.f32 %v276_v36, %v249_v40  ;;  %v1089_v47 = vpop.eup %1088  ;;  %v260_v58 = vpop.permute.xlu2 %259 }
  0xa8   : > { %414 = vmatpush.bf16.msra.mxu0 %v327_v42  ;;  %981 = vmatpush.bf16.msra.mxu3 %v327_v42  ;;  %1090 = vtanh.f32 %v299_v43 }
  0xaa   : > { %499 = vperm.xlu1 %1068, %v1375_v5  }
  0xab   : > { %v204_v45 = vpop.permute.xlu1 %203  ;;  %491 = vperm.xlu0 %1067, %v1391_v7   ;;  %487 = vperm.xlu2 %1069, %v1383_v6  }
  0xac   : > { %v264_v44 = vpop.permute.xlu0 %263  ;;  %v246_v49 = vmul.f32 %v1429_v14, %v204_v45 }
  0xae   : > { %v1091_v48 = vpop.eup %1090  ;;  %v296_v52 = vadd.f32 %v264_v44, %v246_v49 }
  0xaf   : > { %v326_v51 = vpack.c.bf16 %v1091_v48, %v1089_v47  ;;  %v367_v26 = vpop.permute.xlu2 %366 }
  0xb0   : > { %1092 = vtanh.f32 %v296_v52 }
  0xb1   : > { %415 = vmatpush.bf16.msra.mxu0 %v326_v51  ;;  %982 = vmatpush.bf16.msra.mxu3 %v326_v51 }
  0xb2   : > { %479 = vperm.xlu1 %1068, %v1399_v8  }
  0xb3   : > { %483 = vperm.xlu2 %1069, %v1406_v9   ;;  %471 = vperm.xlu0 %1067, %v1418_v11  }
  0xb4   : > { %v268_v55 = vpop.permute.xlu1 %267 }
  0xb5   : > { %v199_v54 = vpop.permute.xlu0 %198  ;;  %v297_v56 = vadd.f32 %v268_v55, %v247_v53 }
  0xb6   : > { %v245_v57 = vmul.f32 %v1429_v14, %v199_v54  ;;  %v1093_v61 = vpop.eup %1092  ;;  %v966_v14 = vld [vmem:[#allocation2 + $0x8] sm:$0xff] }
  0xb7   : > { %1094 = vtanh.f32 %v297_v56  ;;  %v347_v29 = vpop.permute.xlu2 %346 }
  0xb8   : > { %v295_v59 = vadd.f32 %v260_v58, %v245_v57 }
  0xba   : > { %1096 = vtanh.f32 %v295_v59  ;;  %475 = vperm.xlu1 %1068, %v1412_v10  }
  0xbc   : > { %v256_v62 = vpop.permute.xlu1 %255 }
  0xbd   : > { %v1095_v63 = vpop.eup %1094  ;;  %v294_v0 = vadd.f32 %v256_v62, %v244_v60 }
  0xbe   : > { %v325_v1 = vpack.c.bf16 %v1095_v63, %v1093_v61  ;;  %v355_v32 = vpop.permute.xlu0 %354 }
  0xbf   : > { %1098 = vtanh.f32 %v294_v0  ;;  %v339_v39 = vpop.permute.xlu2 %338 }
  0xc0   : > { %416 = vmatpush.bf16.msra.mxu0 %v325_v1  ;;  %983 = vmatpush.bf16.msra.mxu3 %v325_v1  ;;  %v1097_v12 = vpop.eup %1096 }
  0xc5   : > { %v1099_v13 = vpop.eup %1098  ;;  %v363_v25 = vpop.permute.xlu1 %362 }
  0xc6   : > { %v324_v15 = vpack.c.bf16 %v1097_v12, %v1099_v13  ;;  %v343_v42 = vpop.permute.xlu0 %342  ;;  %v971_v12 = vld [vmem:[#allocation2 + $0x30] sm:$0xff]  ;;  %v970_v13 = vld [vmem:[#allocation2 + $0x28] sm:$0xff] }
  0xc7   : > { %v335_v48 = vpop.permute.xlu2 %334 }
  0xc8   : > { %417 = vmatpush.bf16.msra.mxu0 %v324_v15  ;;  %984 = vmatpush.bf16.msra.mxu3 %v324_v15  ;;  %v972_v15 = vld [vmem:[#allocation2 + $0x38] sm:$0xff] }
  0xcb   : > { %909 = vmatmul.msk.bf16.vlgmr.msra.gmra.mxu3 %vm394_vm0, %v966_v14  ;;  %908 = vmatmul.msk.bf16.vlgmr.msra.gmra.mxu0 %vm394_vm0, %v965_v16  ;;  %v973_v14 = vld [vmem:[#allocation2 + $0x40] sm:$0xff]  ;;  %v974_v16 = vld [vmem:[#allocation2 + $0x48] sm:$0xff] }
  0xcd   : > { %v359_v28 = vpop.permute.xlu1 %358 }
  0xd5   : > { %v351_v36 = vpop.permute.xlu1 %350 }
  0xdb   : > { %910 = vmatmul.msk.bf16.gmra.mxu3 %vm394_vm0, %v967_v17 }
  0xdd   : > { %v331_v47 = vpop.permute.xlu1 %330 }
  0xeb   : > { %911 = vmatmul.msk.bf16.gmra.mxu3 %vm394_vm0, %v968_v18 }
  0xfb   : > { %912 = vmatmul.msk.bf16.gmra.mxu3 %vm394_vm0, %v969_v19 }
 0x148   : > { %v419_v34 = vpop.f32.mrf.mxu0 }
 0x149   : > { %v420_v53 = vadd.f32 %v419_v34, %v331_v47 }
 0x14e   : > { %v424_v20 = vpop.f32.mrf.mxu3 }
 0x14f   : > { %v425_v52 = vadd.f32 %v424_v20, %v339_v39 }
 0x150   : > { %v421_v49 = vpop.f32.mrf.mxu0 }
 0x151   : > { %v422_v55 = vadd.f32 %v421_v49, %v335_v48 }
 0x156   : > { %v426_v21 = vpop.f32.mrf.mxu3 }
 0x157   : > { %v427_v46 = vadd.f32 %v426_v21, %v343_v42 }
 0x15e   : > { %v429_v22 = vpop.f32.mrf.mxu3 }
 0x15f   : > { %v430_v43 = vadd.f32 %v429_v22, %v347_v29  ;;  %v508_v22 = vpop.permute.xlu1 %507  ;;  %v1265_v29 = vmov 4  }
 0x160   : > { %1071 = vset.pattern.permute.xlu1 %v1265_v29  ;;  %1070 = vset.pattern.permute.xlu2 %v1265_v29 }
 0x161   : > { %619 = vperm.xlu1 %1071, %v1399_v8   ;;  %611 = vperm.xlu2 %1070, %v1418_v11  }
 0x166   : > { %v431_v23 = vpop.f32.mrf.mxu3 }
 0x167   : > { %v432_v41 = vadd.f32 %v431_v23, %v351_v36 }
 0x169   : > { %627 = vperm.xlu1 %1071, %v1383_v6   ;;  %623 = vperm.xlu2 %1070, %v1406_v9  }
 0x16e   : > { %v434_v24 = vpop.f32.mrf.mxu3 }
 0x16f   : > { %v435_v40 = vadd.f32 %v434_v24, %v355_v32  ;;  %v496_v24 = vpop.permute.xlu2 %495 }
 0x171   : > { %639 = vperm.xlu1 %1071, %v1375_v5   ;;  %631 = vperm.xlu2 %1070, %v1391_v7  }
 0x176   : > { %v436_v27 = vpop.f32.mrf.mxu3 }
 0x177   : > { %v437_v37 = vadd.f32 %v436_v27, %v359_v28  ;;  %v488_v28 = vpop.permute.xlu2 %487 }
 0x179   : > { %643 = vperm.xlu2 %1070, %v1353_v2  }
 0x17e   : > { %v439_v30 = vpop.f32.mrf.mxu3 }
 0x17f   : > { %v440_v33 = vadd.f32 %v439_v30, %v363_v25  ;;  %v504_v25 = vpop.permute.xlu0 %503 }
 0x181   : > { %1100 = vtanh.f32 %v440_v33  ;;  %v1266_v33 = vmov 5  }
 0x182   : > { %1072 = vset.pattern.permute.xlu0 %v1266_v33  ;;  %1074 = vset.pattern.permute.xlu1 %v1266_v33 }
 0x183   : > { %735 = vperm.xlu0 %1072, %v1418_v11   ;;  %739 = vperm.xlu1 %1074, %v1412_v10  }
 0x184   : > { %1075 = vset.pattern.permute.xlu2 %v1266_v33 }
 0x185   : > { %743 = vperm.xlu2 %1075, %v1399_v8   ;;  %v978_v8 = vld [vmem:[#allocation2 + $0x68] sm:$0xff] }
 0x186   : > { %v441_v35 = vpop.f32.mrf.mxu3 }
 0x187   : > { %v442_v38 = vadd.f32 %v441_v35, %v367_v26  ;;  %v1101_v44 = vpop.eup %1100  ;;  %v500_v26 = vpop.permute.xlu1 %499 }
 0x188   : > { %v492_v34 = vpop.permute.xlu0 %491 }
 0x189   : > { %1102 = vtanh.f32 %v442_v38 }
 0x18a   : > { %1104 = vtanh.f32 %v437_v37 }
 0x18b   : > { %1106 = vtanh.f32 %v435_v40  ;;  %v484_v40 = vpop.permute.xlu2 %483  ;;  %1073 = vset.pattern.permute.xlu0 %v1265_v29  ;;  %747 = vperm.xlu1 %1074, %v1406_v9  }
 0x18c   : > { %1108 = vtanh.f32 %v432_v41  ;;  %615 = vperm.xlu0 %1073, %v1412_v10   ;;  %v977_v10 = vld [vmem:[#allocation2 + $0x60] sm:$0xff] }
 0x18d   : > { %1110 = vtanh.f32 %v430_v43  ;;  %751 = vperm.xlu2 %1075, %v1383_v6  }
 0x18e   : > { %1112 = vtanh.f32 %v427_v46 }
 0x18f   : > { %v1103_v45 = vpop.eup %1102  ;;  %1114 = vtanh.f32 %v425_v52  ;;  %v480_v37 = vpop.permute.xlu1 %479 }
 0x190   : > { %v469_v50 = vpack.c.bf16 %v1103_v45, %v1101_v44  ;;  %v1105_v51 = vpop.eup %1104  ;;  %1116 = vtanh.f32 %v420_v53  ;;  %v472_v45 = vpop.permute.xlu0 %471 }
 0x191   : > { %v1107_v54 = vpop.eup %1106  ;;  %1118 = vtanh.f32 %v422_v55 }
 0x192   : > { %553 = vmatpush.bf16.msrb.mxu0 %v469_v50  ;;  %985 = vmatpush.bf16.msra.mxu1 %v469_v50  ;;  %v468_v56 = vpack.c.bf16 %v1105_v51, %v1107_v54  ;;  %v1109_v57 = vpop.eup %1108 }
 0x193   : > { %v1111_v58 = vpop.eup %1110  ;;  %755 = vperm.xlu1 %1074, %v1391_v7  }
 0x194   : > { %v467_v59 = vpack.c.bf16 %v1109_v57, %v1111_v58  ;;  %v1113_v60 = vpop.eup %1112  ;;  %635 = vperm.xlu0 %1073, %v1358_v3  }
 0x195   : > { %v1115_v61 = vpop.eup %1114  ;;  %759 = vperm.xlu2 %1075, %v1358_v3  }
 0x196   : > { %554 = vmatpush.bf16.msrb.mxu0 %v468_v56  ;;  %986 = vmatpush.bf16.msra.mxu1 %v468_v56  ;;  %v1117_v62 = vpop.eup %1116  ;;  %v466_v63 = vpack.c.bf16 %v1113_v60, %v1115_v61 }
 0x197   : > { %v1119_v0 = vpop.eup %1118  ;;  %v476_v46 = vpop.permute.xlu1 %475 }
 0x198   : > { %v465_v1 = vpack.c.bf16 %v1119_v0, %v1117_v62  ;;  %v975_v0 = vld [vmem:[#allocation2 + $0x50] sm:$0xff] }
 0x19a   : > { %555 = vmatpush.bf16.msrb.mxu0 %v467_v59  ;;  %987 = vmatpush.bf16.msra.mxu1 %v467_v59 }
 0x19b   : > { %763 = vperm.xlu1 %1074, %v1375_v5  }
 0x19c   : > { %647 = vperm.xlu0 %1073, %v1370_v4  }
 0x19d   : > { %767 = vperm.xlu2 %1075, %v1353_v2  }
 0x19e   : > { %556 = vmatpush.bf16.msrb.mxu0 %v466_v63  ;;  %988 = vmatpush.bf16.msra.mxu1 %v466_v63 }
 0x1a2   : > { %557 = vmatpush.bf16.msrb.mxu0 %v465_v1  ;;  %989 = vmatpush.bf16.msra.mxu1 %v465_v1  ;;  %v976_v1 = vld [vmem:[#allocation2 + $0x58] sm:$0xff] }
 0x1a4   : > { %1076 = vset.pattern.permute.xlu0 %v1266_v33 }
 0x1a5   : > { %934 = vmatmul.msk.bf16.vlgmr.msra.gmra.mxu1 %vm394_vm0, %v971_v12  ;;  %933 = vmatmul.msk.bf16.vlgmr.msrb.gmra.mxu0 %vm394_vm0, %v970_v13  ;;  %v1267_v12 = vmov 6  }
 0x1a6   : > { %771 = vperm.xlu0 %1076, %v1370_v4   ;;  %1077 = vset.pattern.permute.xlu1 %v1267_v12  ;;  %v979_v4 = vld [vmem:[#allocation2 + $0x70] sm:$0xff] }
 0x1a7   : > { %800 = vperm.xlu1 %1077, %v1418_v11  }
 0x1ae   : > { %1078 = vset.pattern.permute.xlu0 %v1267_v12 }
 0x1b5   : > { %935 = vmatmul.msk.bf16.gmra.mxu1 %vm394_vm0, %v972_v15 }
 0x1bb   : > { %v612_v6 = vpop.permute.xlu2 %611 }
 0x1c3   : > { %v624_v13 = vpop.permute.xlu2 %623 }
 0x1c5   : > { %936 = vmatmul.msk.bf16.gmra.mxu1 %vm394_vm0, %v973_v14 }
 0x1cb   : > { %v632_v3 = vpop.permute.xlu2 %631 }
 0x1d3   : > { %v620_v9 = vpop.permute.xlu1 %619 }
 0x1d5   : > { %937 = vmatmul.msk.bf16.gmra.mxu1 %vm394_vm0, %v974_v16 }
 0x1db   : > { %v628_v15 = vpop.permute.xlu1 %627 }
 0x1e3   : > { %v640_v2 = vpop.permute.xlu1 %639 }
 0x1f5   : > { %v736_v16 = vpop.permute.xlu0 %735 }
 0x1fe   : > { %v616_v11 = vpop.permute.xlu0 %615 }
 0x206   : > { %v636_v33 = vpop.permute.xlu0 %635 }
 0x222   : > { %v564_v17 = vpop.f32.mrf.mxu1  ;;  %v559_v31 = vpop.f32.mrf.mxu0 }
 0x223   : > { %v565_v50 = vadd.f32 %v564_v17, %v480_v37  ;;  %v560_v51 = vadd.f32 %v559_v31, %v472_v45 }
 0x22a   : > { %v566_v18 = vpop.f32.mrf.mxu1  ;;  %v561_v47 = vpop.f32.mrf.mxu0 }
 0x22b   : > { %v567_v44 = vadd.f32 %v566_v18, %v484_v40  ;;  %v562_v53 = vadd.f32 %v561_v47, %v476_v46  ;;  %v644_v18 = vpop.permute.xlu2 %643 }
 0x232   : > { %v569_v19 = vpop.f32.mrf.mxu1 }
 0x233   : > { %v570_v41 = vadd.f32 %v569_v19, %v488_v28 }
 0x23a   : > { %v571_v20 = vpop.f32.mrf.mxu1 }
 0x23b   : > { %v572_v39 = vadd.f32 %v571_v20, %v492_v34 }
 0x242   : > { %v574_v21 = vpop.f32.mrf.mxu1 }
 0x243   : > { %v575_v38 = vadd.f32 %v574_v21, %v496_v24  ;;  %v740_v21 = vpop.permute.xlu1 %739 }
 0x24a   : > { %v576_v23 = vpop.f32.mrf.mxu1 }
 0x24b   : > { %v577_v35 = vadd.f32 %v576_v23, %v500_v26 }
 0x252   : > { %v579_v27 = vpop.f32.mrf.mxu1 }
 0x253   : > { %v580_v30 = vadd.f32 %v579_v27, %v504_v25  ;;  %v744_v25 = vpop.permute.xlu2 %743 }
 0x255   : > { %1120 = vtanh.f32 %v580_v30  ;;  %v748_v30 = vpop.permute.xlu1 %747 }
 0x25a   : > { %v581_v32 = vpop.f32.mrf.mxu1 }
 0x25b   : > { %v582_v36 = vadd.f32 %v581_v32, %v508_v22  ;;  %v1121_v42 = vpop.eup %1120  ;;  %v752_v31 = vpop.permute.xlu2 %751 }
 0x25d   : > { %1122 = vtanh.f32 %v582_v36 }
 0x25e   : > { %1124 = vtanh.f32 %v577_v35 }
 0x25f   : > { %1126 = vtanh.f32 %v575_v38 }
 0x260   : > { %1128 = vtanh.f32 %v572_v39 }
 0x261   : > { %1130 = vtanh.f32 %v570_v41 }
 0x262   : > { %1132 = vtanh.f32 %v567_v44 }
 0x263   : > { %v1123_v43 = vpop.eup %1122  ;;  %1134 = vtanh.f32 %v565_v50  ;;  %v760_v47 = vpop.permute.xlu2 %759 }
 0x264   : > { %v609_v48 = vpack.c.bf16 %v1123_v43, %v1121_v42  ;;  %v1125_v49 = vpop.eup %1124  ;;  %1136 = vtanh.f32 %v560_v51  ;;  %v756_v43 = vpop.permute.xlu1 %755 }
 0x265   : > { %v1127_v52 = vpop.eup %1126  ;;  %1138 = vtanh.f32 %v562_v53 }
 0x266   : > { %693 = vmatpush.bf16.msra.mxu0 %v609_v48  ;;  %990 = vmatpush.bf16.msra.mxu2 %v609_v48  ;;  %v608_v54 = vpack.c.bf16 %v1125_v49, %v1127_v52  ;;  %v1129_v55 = vpop.eup %1128 }
 0x267   : > { %v1131_v56 = vpop.eup %1130 }
 0x268   : > { %v607_v57 = vpack.c.bf16 %v1129_v55, %v1131_v56  ;;  %v1133_v58 = vpop.eup %1132 }
 0x269   : > { %v1135_v59 = vpop.eup %1134 }
 0x26a   : > { %694 = vmatpush.bf16.msra.mxu0 %v608_v54  ;;  %991 = vmatpush.bf16.msra.mxu2 %v608_v54  ;;  %v1137_v60 = vpop.eup %1136  ;;  %v606_v61 = vpack.c.bf16 %v1133_v58, %v1135_v59  ;;  %v648_v54 = vpop.permute.xlu0 %647 }
 0x26b   : > { %v1139_v62 = vpop.eup %1138 }
 0x26c   : > { %v605_v63 = vpack.c.bf16 %v1139_v62, %v1137_v60 }
 0x26e   : > { %695 = vmatpush.bf16.msra.mxu0 %v607_v57  ;;  %992 = vmatpush.bf16.msra.mxu2 %v607_v57 }
 0x272   : > { %696 = vmatpush.bf16.msra.mxu0 %v606_v61  ;;  %993 = vmatpush.bf16.msra.mxu2 %v606_v61 }
 0x276   : > { %697 = vmatpush.bf16.msra.mxu0 %v605_v63  ;;  %994 = vmatpush.bf16.msra.mxu2 %v605_v63  ;;  %v764_v63 = vpop.permute.xlu1 %763 }
 0x279   : > { %958 = vmatmul.msk.bf16.vlgmr.msra.gmra.mxu0 %vm394_vm0, %v975_v0  ;;  %959 = vmatmul.msk.bf16.vlgmr.msra.gmra.mxu2 %vm394_vm0, %v976_v1 }
 0x289   : > { %960 = vmatmul.msk.bf16.gmra.mxu2 %vm394_vm0, %v977_v10  ;;  %v768_v10 = vpop.permute.xlu2 %767 }
 0x299   : > { %961 = vmatmul.msk.bf16.gmra.mxu2 %vm394_vm0, %v978_v8 }
 0x2a9   : > { %962 = vmatmul.msk.bf16.gmra.mxu2 %vm394_vm0, %v979_v4  ;;  %v772_v4 = vpop.permute.xlu0 %771 }
 0x2f6   : > { %v699_v17 = vpop.f32.mrf.mxu0 }
 0x2f7   : > { %v700_v22 = vadd.f32 %v699_v17, %v612_v6 }
 0x2f9   : > { %1140 = vtanh.f32 %v700_v22 }
 0x2fc   : > { %v704_v7 = vpop.f32.mrf.mxu2 }
 0x2fd   : > { %v705_v26 = vadd.f32 %v704_v7, %v620_v9 }
 0x2fe   : > { %v701_v20 = vpop.f32.mrf.mxu0 }
 0x2ff   : > { %v702_v24 = vadd.f32 %v701_v20, %v616_v11  ;;  %v1141_v32 = vpop.eup %1140 }
 0x300   : > { %v774_v37 = vmul.f32 %v1141_v32, %v736_v16 }
 0x301   : > { %1142 = vtanh.f32 %v702_v24 }
 0x302   : > { %1144 = vtanh.f32 %v705_v26 }
 0x304   : > { %v706_v5 = vpop.f32.mrf.mxu2 }
 0x305   : > { %v707_v27 = vadd.f32 %v706_v5, %v624_v13 }
 0x307   : > { %v1143_v34 = vpop.eup %1142  ;;  %1146 = vtanh.f32 %v707_v27 }
 0x308   : > { %v775_v38 = vmul.f32 %v1143_v34, %v740_v21  ;;  %v1145_v40 = vpop.eup %1144 }
 0x309   : > { %v776_v48 = vmul.f32 %v1145_v40, %v744_v25 }
 0x30a   : > { %v784_v45 = vadd.f32 %v775_v38, %v774_v37 }
 0x30c   : > { %v709_v14 = vpop.f32.mrf.mxu2  ;;  %v785_v51 = vadd.f32 %v784_v45, %v776_v48 }
 0x30d   : > { %v710_v29 = vadd.f32 %v709_v14, %v628_v15  ;;  %v1147_v42 = vpop.eup %1146 }
 0x30e   : > { %v777_v49 = vmul.f32 %v1147_v42, %v748_v30 }
 0x30f   : > { %1148 = vtanh.f32 %v710_v29 }
 0x310   : > { %v786_v55 = vadd.f32 %v785_v51, %v777_v49 }
 0x314   : > { %v711_v19 = vpop.f32.mrf.mxu2 }
 0x315   : > { %v712_v35 = vadd.f32 %v711_v19, %v632_v3  ;;  %v1149_v46 = vpop.eup %1148 }
 0x316   : > { %v778_v52 = vmul.f32 %v1149_v46, %v752_v31 }
 0x317   : > { %1150 = vtanh.f32 %v712_v35 }
 0x318   : > { %v787_v60 = vadd.f32 %v786_v55, %v778_v52 }
 0x31c   : > { %v714_v23 = vpop.f32.mrf.mxu2 }
 0x31d   : > { %v715_v36 = vadd.f32 %v714_v23, %v636_v33  ;;  %v1151_v50 = vpop.eup %1150 }
 0x31e   : > { %v779_v56 = vmul.f32 %v1151_v50, %v756_v43 }
 0x31f   : > { %1152 = vtanh.f32 %v715_v36 }
 0x320   : > { %v788_v0 = vadd.f32 %v787_v60, %v779_v56 }
 0x324   : > { %v716_v28 = vpop.f32.mrf.mxu2 }
 0x325   : > { %v717_v39 = vadd.f32 %v716_v28, %v640_v2  ;;  %v1153_v53 = vpop.eup %1152  ;;  %v801_v2 = vpop.permute.xlu1 %800 }
 0x326   : > { %v780_v61 = vmul.f32 %v1153_v53, %v760_v47 }
 0x327   : > { %1154 = vtanh.f32 %v717_v39 }
 0x328   : > { %v789_v8 = vadd.f32 %v788_v0, %v780_v61 }
 0x32c   : > { %v719_v41 = vpop.f32.mrf.mxu2 }
 0x32d   : > { %v720_v44 = vadd.f32 %v719_v41, %v644_v18  ;;  %v1155_v58 = vpop.eup %1154 }
 0x32e   : > { %v781_v1 = vmul.f32 %v1155_v58, %v764_v63 }
 0x32f   : > { %1156 = vtanh.f32 %v720_v44 }
 0x330   : > { %v790_v6 = vadd.f32 %v789_v8, %v781_v1 }
 0x334   : > { %v721_v57 = vpop.f32.mrf.mxu2 }
 0x335   : > { %v722_v59 = vadd.f32 %v721_v57, %v648_v54  ;;  %v1157_v62 = vpop.eup %1156 }
 0x336   : > { %v782_v12 = vmul.f32 %v1157_v62, %v768_v10 }
 0x337   : > { %1158 = vtanh.f32 %v722_v59 }
 0x338   : > { %v791_v13 = vadd.f32 %v790_v6, %v782_v12 }
 0x33d   : > { %v1159_v7 = vpop.eup %1158 }
 0x33e   : > { %v783_v9 = vmul.f32 %v1159_v7, %v772_v4 }
 0x340   : > { %v792_v5 = vadd.f32 %v791_v13, %v783_v9 }
 0x342   : > { %v793_v15 = vrot.slane %v792_v5, 4 }
 0x344   : > { %v794_v3 = vadd.f32 %v793_v15, %v792_v5 }
 0x346   : > { %v795_v14 = vrot.slane %v794_v3, 2 }
 0x348   : > { %v796_v16 = vadd.f32 %v795_v14, %v794_v3 }
 0x34a   : > { %v797_v17 = vrot.slane %v796_v16, 1 }
 0x34c   : > { %v798_v18 = vadd.f32 %v797_v17, %v796_v16 }
 0x34e   : > { %v803_v19 = vadd.f32 %v801_v2, %v798_v18 }
 0x350   : > { %804 = vst [vmem:[%s175_s25] sm:$0x1] %v803_v19 }
 0x351   : > { %1217 = shalt.err (!%p1214_p8)
}
 0x352   : > { %999 = dma.vmem_to_hbm [thread:$0]  (%p1326_p5), %s817_s26, 16, %s819_s27, %s806_s28  }
 0x353 PF: > { %p1011_p9 = scmp.ge.s32.totalorder %s1256_s15, 2  ;;  %s830_s9 = sand.u32 1, %s1244_s12  }
 0x354   : > { %s831_s10 = scalar_lea.sflag [#allocation4], %s830_s9 }
 0x355   : > { %p1006_p10 = pnand %p1011_p9, %p1330_p6 }
 0x357   : > { %p1007_p11 = pneg %p1006_p10 }
 0x359   : > { %1239 = dma.done.wait (%p1007_p11), %s831_s10, 16  }
 0x35a   : > { %1241 = vsyncadd (%p1007_p11), %s831_s10, 4294967280  ;;  %p14_p12 = scmp.ge.s32.totalorder %s1313_s18, 4   ;;  %s1539_s12 = smov %s1248_s13 }
 0x35b   : > { %s1540_s13 = smov %s1252_s14  ;;  %s1541_s14 = smov %s1324_s21 }
 0x35c   : > { %s1542_s15 = smov %s1313_s18  ;;  %16 = sbr.rel (!%p14_p12) target bundleno = 4 (0x4), region = 74 }
 0x361   :  { %836 = vsyncpa [#allocation3], 1 }
 0x362   :  { %838 = vsyncpa [#allocation3 + $0x1], 1 }
 0x363   :  { %839 = vsyncpa [#allocation4], 1 }
 0x364   :  { %841 = vsyncpa [#allocation4 + $0x1], 1 }

</bundles_post_ra>
